<compile_context>
chip_gen: v7x
topology: tpu7x:2x2x1
jax: 0.10.0
libtpu: 0.0.40
codegen_flags: <defaults>
</compile_context>

<pallas_src>
import functools
import math

import jax
import jax.numpy as jnp
import numpy as np
from jax.experimental import pallas as pl
from jax.experimental.pallas import tpu as pltpu


# ----------------------------------------------------------------------------
# Kernel 1: linear layer, tiled over the row (M) dimension for pipelining.
# ----------------------------------------------------------------------------
def _linear_bias_kernel(x_ref, w_ref, b_ref, o_ref):
    acc = jnp.dot(x_ref[...], w_ref[...], preferred_element_type=jnp.float32)
    o_ref[...] = (acc + b_ref[...].astype(jnp.float32)).astype(o_ref.dtype)


def _linear_nobias_kernel(x_ref, w_ref, o_ref):
    o_ref[...] = jnp.dot(x_ref[...], w_ref[...],
                         preferred_element_type=jnp.float32).astype(o_ref.dtype)


def linear_pallas(x2d, w, b=None, *, block_m=512):
    """y = x2d @ w (+ b).  x2d: (M, K), w: (K, N), b: (N,) or None."""
    M, K = x2d.shape
    N = w.shape[1]
    # Row tile: big enough to pipeline DMA against MXU work, small enough that the
    # double-buffered (bm*K + bm*N)*2*4B + K*N*4B working set stays far below the
    # scoped-VMEM limit (v7x has only 64 MiB physical VMEM).
    bm = M if M <= block_m else block_m
    grid = (pl.cdiv(M, bm),)
    x_spec = pl.BlockSpec((bm, K), lambda i: (i, 0))
    w_spec = pl.BlockSpec((K, N), lambda i: (0, 0))
    o_spec = pl.BlockSpec((bm, N), lambda i: (i, 0))
    params = pltpu.CompilerParams(dimension_semantics=("parallel",))
    if b is None:
        return pl.pallas_call(
            _linear_nobias_kernel,
            out_shape=jax.ShapeDtypeStruct((M, N), x2d.dtype),
            grid=grid,
            in_specs=[x_spec, w_spec],
            out_specs=o_spec,
            compiler_params=params,
        )(x2d, w)
    return pl.pallas_call(
        _linear_bias_kernel,
        out_shape=jax.ShapeDtypeStruct((M, N), x2d.dtype),
        grid=grid,
        in_specs=[x_spec, w_spec, pl.BlockSpec((1, N), lambda i: (0, 0))],
        out_specs=o_spec,
        compiler_params=params,
    )(x2d, w, b.reshape(1, N))


# ----------------------------------------------------------------------------
# Kernel 2 (fused): factorized attention (all heads) + CRPE, lane-dense (N, C) output.
# ----------------------------------------------------------------------------
def _fused_attn_crpe_kernel(q_ref, k_ref, v_ref, wc_ref, bc_ref, o_ref, vpad_ref,
                            *, H, W, num_heads, scale):
    N, C = q_ref.shape          # N = 1 + H*W (CLS token first), C = num_heads * Ch
    Ch = C // num_heads
    PAD = W + 1                 # max |row shift| used by the 3x3 conv taps

    q = q_ref[...].astype(jnp.float32)
    k = k_ref[...].astype(jnp.float32)
    v = v_ref[...].astype(jnp.float32)

    # --- factorized attention, all heads at once ------------------------------
    # softmax over the sequence axis (== torch softmax(dim=2))
    k_max = jnp.max(k, axis=0, keepdims=True)
    e = jnp.exp(k - k_max)
    k_sm = e * pl.reciprocal(jnp.sum(e, axis=0, keepdims=True), approx=True)

    # (C, C) = k_sm^T @ v; only the per-head diagonal blocks are needed -> mask the rest.
    kT_v = jax.lax.dot_general(k_sm, v, (((0,), (0,)), ((), ())),
                               preferred_element_type=jnp.float32)
    head_r = jax.lax.broadcasted_iota(jnp.int32, (C, C), 0) // Ch
    head_c = jax.lax.broadcasted_iota(jnp.int32, (C, C), 1) // Ch
    kT_v = jnp.where(head_r == head_c, kT_v, 0.0)

    out = scale * jnp.dot(q, kT_v, preferred_element_type=jnp.float32)   # (N, C)

    # --- CRPE: depthwise 3x3 conv over the HxW image rows (1..N-1), times q ---
    # Copy v into a halo-padded VMEM scratch so every conv tap is a plain in-bounds
    # row-shifted load; taps that fall outside the image are masked to zero.
    vpad_ref[...] = jnp.zeros(vpad_ref.shape, jnp.float32)
    vpad_ref[PAD:PAD + N, :] = v

    n_idx = jax.lax.broadcasted_iota(jnp.int32, (N, 1), 0)
    is_img = n_idx >= 1                       # row 0 is the CLS token -> zero CRPE
    pix = jnp.maximum(n_idx - 1, 0)
    py = pix // W
    px = pix - py * W

    acc = jnp.zeros((N, C), jnp.float32)
    for dy in (-1, 0, 1):
        y_ok = jnp.logical_and(py + dy >= 0, py + dy < H)
        for dx in (-1, 0, 1):
            x_ok = jnp.logical_and(px + dx >= 0, px + dx < W)
            m = jnp.logical_and(y_ok, x_ok)
            off = dy * W + dx
            tap = vpad_ref[PAD + off:PAD + off + N, :]
            t = (dy + 1) * 3 + (dx + 1)
            w_tap = wc_ref[t:t + 1, :].astype(jnp.float32)     # (1, C)
            acc = acc + jnp.where(m, tap, 0.0) * w_tap
    conv = acc + bc_ref[...].astype(jnp.float32)
    out = out + jnp.where(is_img, q * conv, 0.0)

    o_ref[...] = out.astype(o_ref.dtype)


def fused_attn_crpe_pallas(qkv, w_conv9, b_conv, *, H, W, num_heads, scale):
    """qkv: (B, N, 3C) head-concatenated; returns scale*factor_att + crpe as (B, N, C)."""
    B, N, C3 = qkv.shape
    C = C3 // 3
    kernel = functools.partial(_fused_attn_crpe_kernel, H=H, W=W,
                               num_heads=num_heads, scale=scale)
    return pl.pallas_call(
        kernel,
        out_shape=jax.ShapeDtypeStruct((B, N, C), qkv.dtype),
        grid=(B,),
        in_specs=[
            pl.BlockSpec((None, N, C), lambda b: (b, 0, 0)),   # q slice of qkv
            pl.BlockSpec((None, N, C), lambda b: (b, 0, 1)),   # k slice of qkv
            pl.BlockSpec((None, N, C), lambda b: (b, 0, 2)),   # v slice of qkv
            pl.BlockSpec((9, C), lambda b: (0, 0)),            # conv weight (tap, C)
            pl.BlockSpec((1, C), lambda b: (0, 0)),            # conv bias
        ],
        out_specs=pl.BlockSpec((None, N, C), lambda b: (b, 0, 0)),
        scratch_shapes=[pltpu.VMEM((N + 2 * (W + 1), C), jnp.float32)],
        compiler_params=pltpu.CompilerParams(dimension_semantics=("parallel",)),
    )(qkv, qkv, qkv, w_conv9, b_conv)


# ----------------------------------------------------------------------------
# Full forward pass
# ----------------------------------------------------------------------------
def factor_att_conv_rel_pos_enc(x, size, params, num_heads):
    B, N, C = x.shape
    H, W = size
    assert N == 1 + H * W and C % num_heads == 0
    Ch = C // num_heads
    scale = Ch ** (-0.5)

    # qkv projection (qkv_bias=False -> no bias)
    qkv = linear_pallas(x.reshape(B * N, C), params["w_qkv"]).reshape(B, N, 3 * C)

    # fused: scale * factor_att + CRPE, written directly in (B, N, C) layout
    out = fused_attn_crpe_pallas(
        qkv, params["w_conv"].reshape(9, C), params["b_conv"].reshape(1, C),
        H=H, W=W, num_heads=num_heads, scale=scale)

    # output projection (proj_drop p=0.0 -> identity)
    out = linear_pallas(out.reshape(B * N, C), params["w_proj"], params["b_proj"])
    return out.reshape(B, N, C)


# ----------------------------------------------------------------------------
# Pure-JAX reference (mirrors the PyTorch forward) for the correctness check
# ----------------------------------------------------------------------------
def reference(x, size, params, num_heads):
    B, N, C = x.shape
    H, W = size
    Ch = C // num_heads
    scale = Ch ** (-0.5)

    qkv = x @ params["w_qkv"]
    qkv = jnp.transpose(qkv.reshape(B, N, 3, num_heads, Ch), (2, 0, 3, 1, 4))
    q, k, v = qkv[0], qkv[1], qkv[2]

    k_softmax = jax.nn.softmax(k, axis=2)
    kT_v = jnp.einsum("bhnk,bhnv->bhkv", k_softmax, v)
    factor_att = jnp.einsum("bhnk,bhkv->bhnv", q, kT_v)

    q_img = q[:, :, 1:, :]
    v_img = v[:, :, 1:, :]
    v_nchw = jnp.transpose(v_img.reshape(B, num_heads, H, W, Ch),
                           (0, 1, 4, 2, 3)).reshape(B, num_heads * Ch, H, W)
    w_oihw = jnp.transpose(params["w_conv"], (2, 0, 1))[:, None, :, :]
    conv = jax.lax.conv_general_dilated(
        v_nchw, w_oihw, (1, 1), ((1, 1), (1, 1)),
        dimension_numbers=("NCHW", "OIHW", "NCHW"),
        feature_group_count=num_heads * Ch)
    conv = conv + params["b_conv"].reshape(1, -1, 1, 1)
    conv = jnp.transpose(conv.reshape(B, num_heads, Ch, H, W),
                         (0, 1, 3, 4, 2)).reshape(B, num_heads, H * W, Ch)
    ev = q_img * conv
    crpe = jnp.concatenate(
        [jnp.zeros((B, num_heads, 1, Ch), x.dtype), ev], axis=2)

    out = scale * factor_att + crpe
    out = jnp.transpose(out, (0, 2, 1, 3)).reshape(B, N, C)
    out = out @ params["w_proj"] + params["b_proj"]
    return out


if __name__ == "__main__":
    B, H, W = 2, 4, 4
    num_heads, dim = 4, 128
    N = 1 + H * W                       # CLS token + H*W patches (as CoaT's CRPE expects)

    key = jax.random.PRNGKey(0)
    keys = jax.random.split(key, 6)
    x = jax.random.normal(keys[0], (B, N, dim), jnp.float32)
    params = dict(
        w_qkv=jax.random.normal(keys[1], (dim, 3 * dim), jnp.float32) / math.sqrt(dim),
        w_proj=jax.random.normal(keys[2], (dim, dim), jnp.float32) / math.sqrt(dim),
        b_proj=jax.random.normal(keys[3], (dim,), jnp.float32) * 0.01,
        w_conv=jax.random.normal(keys[4], (3, 3, dim), jnp.float32) / 3.0,
        b_conv=jax.random.normal(keys[5], (dim,), jnp.float32) * 0.01,
    )

    out = factor_att_conv_rel_pos_enc(x, (H, W), params, num_heads)
    out = jax.block_until_ready(out)

    ref = jax.block_until_ready(reference(x, (H, W), params, num_heads))
    assert out.shape == (B, N, dim), out.shape
    if not np.allclose(np.asarray(out), np.asarray(ref), rtol=1e-2, atol=1e-2):
        raise AssertionError("Pallas kernel output mismatch vs pure-JAX reference")

    print("KERNEL_OK")
</pallas_src>

<mosaic_0001>
module attributes {stable_mosaic.version = 11 : i64} {
  func.func @_linear_nobias_kernel(%arg0: i32, %arg1: memref<34x128xf32, #tpu.memory_space<vmem>>, %arg2: memref<128x384xf32, #tpu.memory_space<vmem>>, %arg3: memref<34x384xf32, #tpu.memory_space<vmem>>) attributes {dimension_semantics = [#tpu.dimension_semantics<parallel>], iteration_bounds = array<i64: 1>, scalar_prefetch = 0 : i64, scratch_operands = 0 : i64, tpu.core_type = #tpu.core_type<tc>, window_params = [{transform_indices = @transform_0, window_bounds = array<i64: 34, 128>}, {pipeline_mode = #tpu.pipeline_mode<synchronous>, transform_indices = @transform_1, window_bounds = array<i64: 128, 384>}, {transform_indices = @transform_2, window_bounds = array<i64: 34, 384>}]} {
    %c0 = arith.constant 0 : index
    %c0_0 = arith.constant 0 : index
    %0 = vector.load %arg1[%c0, %c0_0] : memref<34x128xf32, #tpu.memory_space<vmem>>, vector<34x128xf32>
    %c0_1 = arith.constant 0 : index
    %c0_2 = arith.constant 0 : index
    %1 = vector.load %arg2[%c0_1, %c0_2] : memref<128x384xf32, #tpu.memory_space<vmem>>, vector<128x384xf32>
    %cst = arith.constant dense<0.000000e+00> : vector<34x384xf32>
    %2 = tpu.matmul %0, %1, %cst {dimension_numbers = #tpu.dot_dimension_numbers<[1], [0], [0], [1], [0, 0, 1, 1], [], []>} : vector<34x128xf32>, vector<128x384xf32>, vector<34x384xf32> -> vector<34x384xf32>
    %c0_3 = arith.constant 0 : index
    %c0_4 = arith.constant 0 : index
    %3 = vector.load %arg3[%c0_3, %c0_4] : memref<34x384xf32, #tpu.memory_space<vmem>>, vector<34x384xf32>
    tpu.vector_store %arg3[%c0_3, %c0_4], %2 {strides = array<i32>} : memref<34x384xf32, #tpu.memory_space<vmem>>, vector<34x384xf32>,
    return
  }
  func.func @transform_0(%arg0: i32) -> (i32, i32) {
    %c0_i32 = arith.constant 0 : i32
    %c0_i32_0 = arith.constant 0 : i32
    return %arg0, %c0_i32 : i32, i32
  }
  func.func @transform_1(%arg0: i32) -> (i32, i32) {
    %c0_i32 = arith.constant 0 : i32
    %c0_i32_0 = arith.constant 0 : i32
    %c0_i32_1 = arith.constant 0 : i32
    return %c0_i32, %c0_i32_0 : i32, i32
  }
  func.func @transform_2(%arg0: i32) -> (i32, i32) {
    %c0_i32 = arith.constant 0 : i32
    %c0_i32_0 = arith.constant 0 : i32
    return %arg0, %c0_i32 : i32, i32
  }
}

</mosaic_0001>

<bundles_post_ra>
// kernel: tpu_custom_call.1
= control target key start
LH: loop header
LB: loop body
LE: loop exit
PB: predicated region body
PF: predicated region fallthrough
CT: control target
= control target key end

     0   :  { %7 = vsyncpa [#allocation3], 0  ;;  %s607_s0 = inlined_call_operand.hbm [shape: f32[34,128], index: 0, kind: input, shape index: {}]   ;;  %s608_s1 = inlined_call_operand.hbm [shape: f32[128,384], index: 1, kind: input, shape index: {}]   ;;  %s609_s2 = inlined_call_operand.hbm [shape: f32[34,384], index: 2, kind: output, shape index: {}]  }
   0x1   :  { %8 = vsyncpa [#allocation6], 0 }
   0x2   :  { %9 = vsyncpa [#allocation4], 0  ;;  %s517_s9 = smov [#allocation2]   ;;  %s445_s13 = scalar_lea.hbm %s607_s0, 640 }
   0x3   :  { %s15_s10 = sshll.u32 %s517_s9, 4  ;;  %p446_p0 = scmp.ne.s32.totalorder %s607_s0, %s445_s13  ;;  %s16_s10 = int_to_ptr.vmem [resolvable:$true] %s15_s10 }
   0x4   :  { %p449_p1 = scmp.lt.u32.totalorder %s445_s13, %s607_s0 }
   0x6   :  { %p451_p2 = pnand %p449_p1, %p446_p0 }
   0x8   :  { %454 = shalt.err (!%p451_p2)
}
   0x9   :  { %s455_s18 = scalar_lea.vmem %s16_s10, 640  ;;  %p460_p4 = scmp.lt.s32.totalorder %s16_s10, %s16_s10 }
   0xa   :  { %p456_p3 = scmp.ne.s32.totalorder %s16_s10, %s455_s18  ;;  %p461_p5 = scmp.lt.s32.totalorder %s455_s18, %s455_s18 }
   0xc   :  { %p462_p6 = por %p461_p5, %p460_p4 }
   0xe   :  { %p463_p7 = pnand %p462_p6, %p456_p3 }
  0x10   :  { %466 = shalt.err (!%p463_p7)
}
  0x11   :  { %s518_s19 = smov 128   ;;  %s519_s20 = smov 8  }
  0x12   :  { %21 = dma.hbm_to_vmem [thread:$0]  %s607_s0, 640, %s16_s10, [#allocation3], %s518_s19, %s518_s19, %s519_s20  }
  0x13   :  { %s520_s23 = smov [#allocation5]   ;;  %s467_s27 = scalar_lea.hbm %s608_s1, 6144 }
  0x14   :  { %s27_s24 = sshll.u32 %s520_s23, 4  ;;  %p468_p8 = scmp.ne.s32.totalorder %s608_s1, %s467_s27  ;;  %s28_s24 = int_to_ptr.vmem [resolvable:$true] %s27_s24 }
  0x15   :  { %p471_p9 = scmp.lt.u32.totalorder %s467_s27, %s608_s1 }
  0x17   :  { %p473_p10 = pnand %p471_p9, %p468_p8 }
  0x19   :  { %476 = shalt.err (!%p473_p10)
}
  0x1a   :  { %s477_s4 = scalar_lea.vmem %s28_s24, 6144  ;;  %p482_p12 = scmp.lt.s32.totalorder %s28_s24, %s28_s24 }
  0x1b   :  { %p478_p11 = scmp.ne.s32.totalorder %s28_s24, %s477_s4  ;;  %p483_p13 = scmp.lt.s32.totalorder %s477_s4, %s477_s4 }
  0x1d   :  { %p484_p0 = por %p483_p13, %p482_p12 }
  0x1f   :  { %p485_p1 = pnand %p484_p0, %p478_p11 }
  0x21   :  { %488 = shalt.err (!%p485_p1)
}
  0x22   :  { %s521_s0 = smov 384   ;;  %s522_s5 = smov 24  }
  0x23   :  { %33 = dma.hbm_to_vmem [thread:$0]  %s608_s1, 6144, %s28_s24, [#allocation6], %s521_s0, %s521_s0, %s522_s5  }
  0x24   :  { %511 = dma.done.wait [#allocation3], 640  }
  0x25   :  { %512 = vsyncadd [#allocation3], 4294966656 }
  0x26   :  { %513 = dma.done.wait [#allocation6], 6144  }
  0x27   :  { %514 = vsyncadd [#allocation6], 4294961152  ;;  %v523_v0 = vmov 0.0|0.0   ;;  %v524_v1 = vmov 0.0   ;;  %vm525_vm0 = vmmov 0   ;;  %v46_v2 = vld [vmem:[#allocation5 + $0x8] sm:$0xff] }
  0x28   :  { %411 = vmatprep.subr.bf16.mxu1 %v523_v0  ;;  %157 = vmatprep.mubr.f32.mxu0 %v524_v1  ;;  %v49_v3 = vld [vmem:[#allocation5 + $0x20] sm:$0xff]  ;;  %v48_v6 = vld [vmem:[#allocation5 + $0x18] sm:$0xff]  ;;  %v47_v7 = vld [vmem:[#allocation5 + $0x10] sm:$0xff]  ;;  %s526_s1 = smov [#allocation7]  }
  0x29   :  { %364 = vmatprep.mubr.msk.f32.mxu1 %vm525_vm0, %v524_v1  ;;  %v45_v4 = vld [vmem:[#allocation5] sm:$0xff]  ;;  %v379_v5 = vpack.c.bf16 %v49_v3, %v46_v2  ;;  %v50_v8 = vld [vmem:[#allocation5 + $0x28] sm:$0xff]  ;;  %v52_v11 = vld [vmem:[#allocation5 + $0x38] sm:$0xff]  ;;  %s298_s8 = sshll.u32 %s526_s1, 4  ;;  %s299_s8 = int_to_ptr.vmem [resolvable:$true] %s298_s8 }
  0x2a   :  { %v381_v9 = vpack.c.bf16 %v48_v6, %v45_v4  ;;  %v412_v10 = vpack.c.bf16 %v50_v8, %v47_v7  ;;  %v55_v12 = vld [vmem:[#allocation5 + $0x50] sm:$0xff]  ;;  %v54_v15 = vld [vmem:[#allocation5 + $0x48] sm:$0xff]  ;;  %v53_v16 = vld [vmem:[#allocation5 + $0x40] sm:$0xff]  ;;  %s489_s9 = scalar_lea.vmem %s299_s8, 1920  ;;  %p494_p3 = scmp.lt.s32.totalorder %s299_s8, %s299_s8 }
  0x2b   :  { %v51_v13 = vld [vmem:[#allocation5 + $0x30] sm:$0xff]  ;;  %380 = vmatprep.subr.bf16.mxu0 %v379_v5  ;;  %v383_v14 = vpack.c.bf16 %v55_v12, %v52_v11  ;;  %v56_v17 = vld [vmem:[#allocation5 + $0x58] sm:$0xff]  ;;  %v58_v20 = vld [vmem:[#allocation5 + $0x68] sm:$0xff]  ;;  %p490_p2 = scmp.ne.s32.totalorder %s299_s8, %s489_s9  ;;  %p495_p4 = scmp.lt.s32.totalorder %s489_s9, %s489_s9 }
  0x2c   :  { %382 = vmatpush1.bf16.msra.mxu0 %v381_v9  ;;  %413 = vmatpush3.bf16.msra.mxu1 %v412_v10  ;;  %v385_v18 = vpack.c.bf16 %v54_v15, %v51_v13  ;;  %v415_v19 = vpack.c.bf16 %v56_v17, %v53_v16  ;;  %v61_v21 = vld [vmem:[#allocation5 + $0x80] sm:$0xff]  ;;  %v60_v24 = vld [vmem:[#allocation5 + $0x78] sm:$0xff]  ;;  %v59_v25 = vld [vmem:[#allocation5 + $0x70] sm:$0xff] }
  0x2d   :  { %v57_v22 = vld [vmem:[#allocation5 + $0x60] sm:$0xff]  ;;  %384 = vmatprep.subr.bf16.mxu0 %v383_v14  ;;  %414 = vmatprep.subr.bf16.mxu1 %v523_v0  ;;  %v387_v23 = vpack.c.bf16 %v61_v21, %v58_v20  ;;  %v62_v26 = vld [vmem:[#allocation5 + $0x88] sm:$0xff]  ;;  %v64_v27 = vld [vmem:[#allocation5 + $0x98] sm:$0xff]  ;;  %p496_p5 = por %p495_p4, %p494_p3 }
  0x2e   :  { %v67_v28 = vld [vmem:[#allocation5 + $0xb0] sm:$0xff]  ;;  %v389_v29 = vpack.c.bf16 %v60_v24, %v57_v22  ;;  %v418_v30 = vpack.c.bf16 %v62_v26, %v59_v25  ;;  %v66_v33 = vld [vmem:[#allocation5 + $0xa8] sm:$0xff]  ;;  %v65_v34 = vld [vmem:[#allocation5 + $0xa0] sm:$0xff] }
  0x2f   :  { %v63_v31 = vld [vmem:[#allocation5 + $0x90] sm:$0xff]  ;;  %v391_v32 = vpack.c.bf16 %v67_v28, %v64_v27  ;;  %v68_v35 = vld [vmem:[#allocation5 + $0xb8] sm:$0xff]  ;;  %v70_v36 = vld [vmem:[#allocation5 + $0xc8] sm:$0xff]  ;;  %p497_p6 = pnand %p496_p5, %p490_p2 }
  0x30   :  { %386 = vmatpush1.bf16.msra.mxu0 %v385_v18  ;;  %416 = vmatpush3.bf16.msra.mxu1 %v415_v19  ;;  %v73_v37 = vld [vmem:[#allocation5 + $0xe0] sm:$0xff]  ;;  %v393_v38 = vpack.c.bf16 %v66_v33, %v63_v31  ;;  %v421_v39 = vpack.c.bf16 %v68_v35, %v65_v34  ;;  %v72_v42 = vld [vmem:[#allocation5 + $0xd8] sm:$0xff]  ;;  %v71_v43 = vld [vmem:[#allocation5 + $0xd0] sm:$0xff] }
  0x31   :  { %388 = vmatprep.subr.bf16.mxu0 %v387_v23  ;;  %417 = vmatprep.subr.bf16.mxu1 %v523_v0  ;;  %v69_v40 = vld [vmem:[#allocation5 + $0xc0] sm:$0xff]  ;;  %v395_v41 = vpack.c.bf16 %v73_v37, %v70_v36  ;;  %v74_v44 = vld [vmem:[#allocation5 + $0xe8] sm:$0xff]  ;;  %v76_v45 = vld [vmem:[#allocation5 + $0xf8] sm:$0xff] }
  0x32   :  { %v79_v46 = vld [vmem:[#allocation5 + $0x110] sm:$0xff]  ;;  %v397_v47 = vpack.c.bf16 %v72_v42, %v69_v40  ;;  %v424_v48 = vpack.c.bf16 %v74_v44, %v71_v43  ;;  %v78_v51 = vld [vmem:[#allocation5 + $0x108] sm:$0xff]  ;;  %v77_v52 = vld [vmem:[#allocation5 + $0x100] sm:$0xff] }
  0x33   :  { %v75_v49 = vld [vmem:[#allocation5 + $0xf0] sm:$0xff]  ;;  %v399_v50 = vpack.c.bf16 %v79_v46, %v76_v45  ;;  %v80_v53 = vld [vmem:[#allocation5 + $0x118] sm:$0xff]  ;;  %v82_v54 = vld [vmem:[#allocation5 + $0x128] sm:$0xff] }
  0x34   :  { %390 = vmatpush1.bf16.msra.mxu0 %v389_v29  ;;  %419 = vmatpush3.bf16.msra.mxu1 %v418_v30  ;;  %v85_v55 = vld [vmem:[#allocation5 + $0x140] sm:$0xff]  ;;  %v401_v56 = vpack.c.bf16 %v78_v51, %v75_v49  ;;  %v427_v57 = vpack.c.bf16 %v80_v53, %v77_v52  ;;  %v84_v60 = vld [vmem:[#allocation5 + $0x138] sm:$0xff]  ;;  %v83_v61 = vld [vmem:[#allocation5 + $0x130] sm:$0xff] }
  0x35   :  { %392 = vmatprep.subr.bf16.mxu0 %v391_v32  ;;  %420 = vmatprep.subr.bf16.mxu1 %v523_v0  ;;  %v81_v58 = vld [vmem:[#allocation5 + $0x120] sm:$0xff]  ;;  %v403_v59 = vpack.c.bf16 %v85_v55, %v82_v54  ;;  %v86_v62 = vld [vmem:[#allocation5 + $0x148] sm:$0xff]  ;;  %v88_v63 = vld [vmem:[#allocation5 + $0x158] sm:$0xff] }
  0x36   :  { %v91_v2 = vld [vmem:[#allocation5 + $0x170] sm:$0xff]  ;;  %v405_v3 = vpack.c.bf16 %v84_v60, %v81_v58  ;;  %v430_v4 = vpack.c.bf16 %v86_v62, %v83_v61  ;;  %v90_v7 = vld [vmem:[#allocation5 + $0x168] sm:$0xff]  ;;  %v89_v8 = vld [vmem:[#allocation5 + $0x160] sm:$0xff] }
  0x37   :  { %v87_v5 = vld [vmem:[#allocation5 + $0x150] sm:$0xff]  ;;  %v407_v6 = vpack.c.bf16 %v91_v2, %v88_v63  ;;  %v92_v9 = vld [vmem:[#allocation5 + $0x178] sm:$0xff]  ;;  %v41_v13 = vld [vmem:[#allocation2 + $0x8] sm:$0xff] }
  0x38   :  { %394 = vmatpush1.bf16.msra.mxu0 %v393_v38  ;;  %422 = vmatpush3.bf16.msra.mxu1 %v421_v39  ;;  %v409_v10 = vpack.c.bf16 %v90_v7, %v87_v5  ;;  %v433_v11 = vpack.c.bf16 %v92_v9, %v89_v8  ;;  %v40_v12 = vld [vmem:[#allocation2] sm:$0xff]  ;;  %v42_v14 = vld [vmem:[#allocation2 + $0x10] sm:$0xff] }
  0x39   :  { %396 = vmatprep.subr.bf16.mxu0 %v395_v41  ;;  %423 = vmatprep.subr.bf16.mxu1 %v523_v0  ;;  %v44_v15 = vld [vmem:[#allocation2 + $0x20] sm:$0x3] }
  0x3c   :  { %398 = vmatpush1.bf16.msra.mxu0 %v397_v47  ;;  %425 = vmatpush3.bf16.msra.mxu1 %v424_v48 }
  0x3d   :  { %400 = vmatprep.subr.bf16.mxu0 %v399_v50  ;;  %426 = vmatprep.subr.bf16.mxu1 %v523_v0 }
  0x40   :  { %402 = vmatpush1.bf16.msra.mxu0 %v401_v56  ;;  %428 = vmatpush3.bf16.msra.mxu1 %v427_v57 }
  0x41   :  { %404 = vmatprep.subr.bf16.mxu0 %v403_v59  ;;  %429 = vmatprep.subr.bf16.mxu1 %v523_v0 }
  0x44   :  { %406 = vmatpush1.bf16.msra.mxu0 %v405_v3  ;;  %431 = vmatpush3.bf16.msra.mxu1 %v430_v4 }
  0x45   :  { %408 = vmatprep.subr.bf16.mxu0 %v407_v6  ;;  %432 = vmatprep.subr.bf16.mxu1 %v523_v0  ;;  %v43_v0 = vld [vmem:[#allocation2 + $0x18] sm:$0xff] }
  0x48   :  { %410 = vmatpush1.bf16.msra.mxu0 %v409_v10  ;;  %434 = vmatpush3.bf16.msra.mxu1 %v433_v11 }
  0x4b   :  { %158 = vmatmul.mubr.f32.vlgmr.msra.gmra.mrb[0].mxu0 %v40_v12  ;;  %365 = vmatmul.mubr.f32.vlgmr.msra.gmra.mrb[0].mxu1 %v40_v12 }
  0x4c   :  { %163 = vmatprep.mubr.f32.mxu0 %v524_v1  ;;  %367 = vmatprep.mubr.msk.f32.mxu1 %vm525_vm0, %v524_v1 }
  0x4f   :  { %164 = vmatmul.mubr.f32.gmra.mrb[2].mxu0 %v41_v13  ;;  %368 = vmatmul.mubr.f32.gmra.mrb[2].mxu1 %v41_v13 }
  0x50   :  { %169 = vmatprep.mubr.f32.mxu0 %v524_v1  ;;  %370 = vmatprep.mubr.msk.f32.mxu1 %vm525_vm0, %v524_v1 }
  0x53   :  { %170 = vmatmul.mubr.f32.gmra.mrb[4].mxu0 %v42_v14  ;;  %371 = vmatmul.mubr.f32.gmra.mrb[4].mxu1 %v42_v14 }
  0x54   :  { %175 = vmatprep.mubr.f32.mxu0 %v524_v1  ;;  %373 = vmatprep.mubr.msk.f32.mxu1 %vm525_vm0, %v524_v1 }
  0x57   :  { %176 = vmatmul.mubr.f32.gmra.mrb[6].mxu0 %v43_v0  ;;  %374 = vmatmul.mubr.f32.gmra.mrb[6].mxu1 %v43_v0 }
  0x58   :  { %181 = vmatprep.mubr.f32.mxu0 %v524_v1  ;;  %376 = vmatprep.mubr.msk.f32.mxu1 %vm525_vm0, %v524_v1 }
  0x5b   :  { %182 = vmatmul.mubr.f32.gmra.mrb[8].mxu0 %v44_v15  ;;  %377 = vmatmul.mubr.f32.gmra.mrb[8].mxu1 %v44_v15 }
 0x11e   :  { %v159_v16 = vpop.f32.mrb[0].mxu0  ;;  %v254_v17 = vpop.f32.mrb[0].mxu1 }
 0x11f   :  { %278 = vst [vmem:[#allocation7] sm:$0xff] %v159_v16  ;;  %280 = vst [vmem:[#allocation7 + $0x10] sm:$0xff] %v254_v17  ;;  %v161_v18 = vpop.f32.mrb[1].mxu0  ;;  %v366_v19 = vpop.f32.mrb[1].mxu1 }
 0x120   :  { %279 = vst [vmem:[#allocation7 + $0x8] sm:$0xff] %v161_v18 }
 0x122   :  { %v165_v20 = vpop.f32.mrb[2].mxu0  ;;  %v259_v21 = vpop.f32.mrb[2].mxu1 }
 0x123   :  { %281 = vst [vmem:[#allocation7 + $0x18] sm:$0xff] %v165_v20  ;;  %283 = vst [vmem:[#allocation7 + $0x28] sm:$0xff] %v259_v21  ;;  %v167_v22 = vpop.f32.mrb[3].mxu0  ;;  %v369_v23 = vpop.f32.mrb[3].mxu1 }
 0x124   :  { %282 = vst [vmem:[#allocation7 + $0x20] sm:$0xff] %v167_v22 }
 0x126   :  { %v171_v24 = vpop.f32.mrb[4].mxu0  ;;  %v264_v25 = vpop.f32.mrb[4].mxu1 }
 0x127   :  { %284 = vst [vmem:[#allocation7 + $0x30] sm:$0xff] %v171_v24  ;;  %286 = vst [vmem:[#allocation7 + $0x40] sm:$0xff] %v264_v25  ;;  %v173_v1 = vpop.f32.mrb[5].mxu0  ;;  %v372_v26 = vpop.f32.mrb[5].mxu1 }
 0x128   :  { %285 = vst [vmem:[#allocation7 + $0x38] sm:$0xff] %v173_v1 }
 0x12a   :  { %v177_v27 = vpop.f32.mrb[6].mxu0  ;;  %v269_v28 = vpop.f32.mrb[6].mxu1 }
 0x12b   :  { %287 = vst [vmem:[#allocation7 + $0x48] sm:$0xff] %v177_v27  ;;  %289 = vst [vmem:[#allocation7 + $0x58] sm:$0xff] %v269_v28  ;;  %v179_v29 = vpop.f32.mrb[7].mxu0  ;;  %v375_v30 = vpop.f32.mrb[7].mxu1 }
 0x12c   :  { %288 = vst [vmem:[#allocation7 + $0x50] sm:$0xff] %v179_v29 }
 0x12e   :  { %v183_v31 = vpop.f32.mrb[8].mxu0  ;;  %v274_v32 = vpop.f32.mrb[8].mxu1 }
 0x12f   :  { %290 = vst [vmem:[#allocation7 + $0x60] sm:$0x3] %v183_v31  ;;  %292 = vst [vmem:[#allocation7 + $0x70] sm:$0x3] %v274_v32  ;;  %v185_v33 = vpop.f32.mrb[9].mxu0  ;;  %v378_v34 = vpop.f32.mrb[9].mxu1 }
 0x130   :  { %291 = vst [vmem:[#allocation7 + $0x68] sm:$0x3] %v185_v33 }
 0x131   :  { %500 = shalt.err (!%p497_p6)
}
 0x132   :  { %s501_s12 = scalar_lea.hbm %s609_s2, 1920 }
 0x133   :  { %p502_p7 = scmp.ne.s32.totalorder %s609_s2, %s501_s12  ;;  %p505_p8 = scmp.lt.u32.totalorder %s501_s12, %s609_s2 }
 0x135   :  { %p507_p9 = pnand %p505_p8, %p502_p7 }
 0x137   :  { %510 = shalt.err (!%p507_p9)
}
 0x138   :  { %304 = dma.vmem_to_hbm [thread:$0]  %s299_s8, 1920, %s609_s2, [#allocation4], %s521_s0, %s521_s0, %s522_s5  }
 0x139   :  { %515 = dma.done.wait [#allocation4], 1920  }
 0x13a   :  { %516 = vsyncadd [#allocation4], 4294965376 }
 0x13b   :  { %308 = vsyncpa [#allocation3], 1 }
 0x13c   :  { %309 = vsyncpa [#allocation6], 1 }
 0x13d   :  { %310 = vsyncpa [#allocation4], 1 }

</bundles_post_ra>
